<compile_context>
chip_gen: v5e
topology: v5e:2x2
jax: 0.10.0
libtpu: 0.0.40
codegen_flags: <defaults>
</compile_context>

<pallas_src>
import functools

import jax
import jax.numpy as jnp
from jax import lax
from jax.experimental import pallas as pl
from jax.experimental.pallas import tpu as pltpu


def _vmem_limit_bytes():
    """Per-generation scoped-VMEM limit with headroom under the physical cap."""
    try:
        cap = pltpu.get_tpu_info().vmem_capacity_bytes
    except Exception:  # not resolvable at trace time -> conservative default
        cap = 128 * 1024 * 1024
    return int(min(cap * 5 // 8, 64 * 1024 * 1024))


# --------------------------------------------------------------------------
# Fully fused kernel: QKV proj -> attention -> output proj (one pallas_call)
# --------------------------------------------------------------------------
def _fused_attn_kernel(x_ref, wq_ref, wk_ref, wv_ref, bq_ref, bk_ref, bv_ref,
                       wp_ref, bp_ref, bias_ref, o_ref, *, num_heads, groups):
    bp = bp_ref[...]                                      # (1, C) fp32
    for g in range(groups):
        x = x_ref[g].astype(jnp.bfloat16)                 # (N, C)
        acc = jnp.zeros(x.shape, jnp.float32)             # (N, C) proj accumulator
        for h in range(num_heads):
            # Per-head projections against head-split resident weights:
            # no lane slicing of activations; qk scale folded into wq/bq.
            qh = (jnp.dot(x, wq_ref[h], preferred_element_type=jnp.float32)
                  + bq_ref[h]).astype(jnp.bfloat16)       # (N, D)
            kh = (jnp.dot(x, wk_ref[h], preferred_element_type=jnp.float32)
                  + bk_ref[h]).astype(jnp.bfloat16)       # (N, D)
            vh = (jnp.dot(x, wv_ref[h], preferred_element_type=jnp.float32)
                  + bv_ref[h]).astype(jnp.bfloat16)       # (N, D)
            # q @ k^T via dot_general (contract last dims; no transpose).
            s = lax.dot_general(qh, kh, (((1,), (1,)), ((), ())),
                                preferred_element_type=jnp.float32)   # (N, N)
            s = s + bias_ref[h]                           # fp32 position bias
            s = s - jnp.max(s, axis=-1, keepdims=True)
            p = jnp.exp(s)                                # fp32 softmax math
            denom = jnp.sum(p, axis=-1, keepdims=True)    # (N, 1)
            pv = jnp.dot(p.astype(jnp.bfloat16), vh,
                         preferred_element_type=jnp.float32)          # (N, D)
            pv = pv * pl.reciprocal(denom, approx=True)   # deferred norm (EUP)
            # Output projection folded per head: acc += pv @ Wp[h*D:(h+1)*D, :]
            # -> no concatenate / transpose; per-head temporaries die here.
            acc = acc + jnp.dot(pv.astype(jnp.bfloat16), wp_ref[h],
                                preferred_element_type=jnp.float32)   # (N, C)
        o_ref[g] = (acc + bp).astype(o_ref.dtype)         # lane-dense (N, C) store


def _pick_group_block(B_, N):
    """Groups per grid step: small divisor of B_, ~512 rows of work per step."""
    target = max(1, 512 // max(N, 1))
    g = max(1, min(B_, 4, target))
    while B_ % g:
        g -= 1
    return max(g, 1)


def attention_fused(x, prep, *, num_heads):
    """x: (B_, N, C) fp32; prep: dict from prepare_attention -> (B_, N, C)."""
    B_, N, C = x.shape
    assert C % num_heads == 0
    D = C // num_heads
    G = _pick_group_block(B_, N)
    grid = (B_ // G,)

    kernel = functools.partial(_fused_attn_kernel, num_heads=num_heads, groups=G)
    const3 = lambda b: (0, 0, 0)
    w_spec = pl.BlockSpec((num_heads, C, D), const3)      # resident weights
    b_spec = pl.BlockSpec((num_heads, 1, D), const3)      # resident biases
    x_spec = pl.BlockSpec((G, N, C), lambda b: (b, 0, 0))

    flops = B_ * (8 * N * C * C + 4 * num_heads * N * N * D)
    bytes_accessed = (2 * B_ * N * C * 4                   # x in + out (fp32)
                      + 4 * num_heads * C * D * 2          # wq/wk/wv/wp (bf16)
                      + num_heads * N * N * 4)             # position bias (fp32)

    return pl.pallas_call(
        kernel,
        out_shape=jax.ShapeDtypeStruct((B_, N, C), x.dtype),
        grid=grid,
        in_specs=[
            x_spec,
            w_spec, w_spec, w_spec,                        # wq, wk, wv (nh, C, D)
            b_spec, b_spec, b_spec,                        # bq, bk, bv (nh, 1, D)
            pl.BlockSpec((num_heads, D, C), const3),       # wp (nh, D, C)
            pl.BlockSpec((1, C), lambda b: (0, 0)),        # bp
            pl.BlockSpec((num_heads, N, N), const3),       # rel_bias (resident)
        ],
        out_specs=pl.BlockSpec((G, N, C), lambda b: (b, 0, 0)),
        compiler_params=pltpu.CompilerParams(
            dimension_semantics=("parallel",),
            vmem_limit_bytes=_vmem_limit_bytes()),
        cost_estimate=pl.CostEstimate(
            flops=flops,
            transcendentals=B_ * num_heads * N * N,
            bytes_accessed=bytes_accessed),
    )(x, prep["wq"], prep["wk"], prep["wv"], prep["bq"], prep["bk"], prep["bv"],
      prep["wp"], prep["bp"], prep["rel_bias"])


# --------------------------------------------------------------------------
# DynamicPosBias (tiny MLP) + relative position index — one-time host glue
# --------------------------------------------------------------------------
def _layer_norm(x, gamma, beta, eps=1e-5):
    mean = jnp.mean(x, axis=-1, keepdims=True)
    var = jnp.mean((x - mean) ** 2, axis=-1, keepdims=True)
    return (x - mean) / jnp.sqrt(var + eps) * gamma + beta


def dynamic_pos_bias(biases, p):
    x = biases @ p["proj_w"] + p["proj_b"]
    for name in ("pos1", "pos2", "pos3"):
        blk = p[name]
        x = _layer_norm(x, blk["ln_g"], blk["ln_b"])
        x = jnp.maximum(x, 0.0)
        x = x @ blk["w"] + blk["b"]
    return x  # ((2H-1)*(2W-1), num_heads)


def relative_position_index(H, W):
    coords = jnp.stack(jnp.meshgrid(jnp.arange(H), jnp.arange(W), indexing="ij"))
    coords_flatten = coords.reshape(2, -1)                               # (2, N)
    rel = coords_flatten[:, :, None] - coords_flatten[:, None, :]        # (2, N, N)
    rel = rel.transpose(1, 2, 0)
    rel = rel.at[:, :, 0].add(H - 1)
    rel = rel.at[:, :, 1].add(W - 1)
    rel = rel.at[:, :, 0].multiply(2 * W - 1)
    return rel.sum(-1)  # (N, N)


def make_rel_bias(H, W, pos_params, num_heads):
    pos_h = jnp.arange(1 - H, H)
    pos_w = jnp.arange(1 - W, W)
    bg = jnp.stack(jnp.meshgrid(pos_h, pos_w, indexing="ij"))            # (2, 2H-1, 2W-1)
    biases = bg.reshape(2, -1).T.astype(jnp.float32)                     # (M2, 2)
    pos = dynamic_pos_bias(biases, pos_params)                           # (M2, nh)
    rpi = relative_position_index(H, W)                                  # (N, N)
    rel = pos[rpi.reshape(-1)].reshape(H * W, H * W, num_heads)
    return rel.transpose(2, 0, 1).astype(jnp.float32)                    # (nh, N, N)


# --------------------------------------------------------------------------
# One-time weight preparation (scale folding, head-major split, bf16 cast)
# --------------------------------------------------------------------------
def prepare_attention(params, num_heads, H, W):
    C = params["proj_w"].shape[0]
    D = C // num_heads
    scale = D ** (-0.5)
    qkv_w, qkv_b = params["qkv_w"], params["qkv_b"]

    def split_w(w):  # (C, C) -> (nh, C, D), column h*D+d -> head h, dim d
        return w.reshape(C, num_heads, D).transpose(1, 0, 2).astype(jnp.bfloat16)

    def split_b(b):  # (C,) -> (nh, 1, D)
        return b.reshape(num_heads, 1, D).astype(jnp.float32)

    return {
        "wq": split_w(qkv_w[:, :C] * scale),
        "wk": split_w(qkv_w[:, C:2 * C]),
        "wv": split_w(qkv_w[:, 2 * C:]),
        "bq": split_b(qkv_b[:C] * scale),
        "bk": split_b(qkv_b[C:2 * C]),
        "bv": split_b(qkv_b[2 * C:]),
        "wp": params["proj_w"].reshape(num_heads, D, C).astype(jnp.bfloat16),
        "bp": params["proj_b"].reshape(1, C).astype(jnp.float32),
        "rel_bias": make_rel_bias(H, W, params["pos"], num_heads),
    }


def attention_forward(x, H, W, params, num_heads, mask=None, prep=None):
    """Full forward matching Attention.forward(x, H, W, mask=None)."""
    if mask is not None:
        # TODO(synk): the optional `mask` branch is not implemented.
        raise NotImplementedError("mask != None is not supported")
    B_, N, C = x.shape
    assert H * W == N
    if prep is None:
        prep = prepare_attention(params, num_heads, H, W)
    return attention_fused(x, prep, num_heads=num_heads)
    # NOTE: attn_drop / proj_drop are identity at p=0.0 (inference path).


# --------------------------------------------------------------------------
# Pure-JAX fp32 reference (mirrors the PyTorch module) for validation
# --------------------------------------------------------------------------
def attention_reference(x, H, W, params, num_heads):
    B_, N, C = x.shape
    D = C // num_heads
    scale = D ** (-0.5)
    qkv = x @ params["qkv_w"] + params["qkv_b"]
    qkv = qkv.reshape(B_, N, 3, num_heads, D).transpose(2, 0, 3, 1, 4)
    q, k, v = qkv[0], qkv[1], qkv[2]                                     # (B_, nh, N, D)
    attn = (q * scale) @ jnp.swapaxes(k, -2, -1)                         # (B_, nh, N, N)
    attn = attn + make_rel_bias(H, W, params["pos"], num_heads)[None]
    attn = jax.nn.softmax(attn, axis=-1)
    out = (attn @ v).transpose(0, 2, 1, 3).reshape(B_, N, C)
    return out @ params["proj_w"] + params["proj_b"]


# --------------------------------------------------------------------------
# Deterministic parameter init
# --------------------------------------------------------------------------
def init_params(key, dim, num_heads):
    pos_inner = dim // 4          # DynamicPosBias dim
    pos_dim = pos_inner // 4      # DynamicPosBias.pos_dim
    ks = jax.random.split(key, 8)

    def w(k, shape, fan_in):
        return jax.random.normal(k, shape, jnp.float32) / jnp.sqrt(fan_in)

    return {
        "qkv_w": w(ks[0], (dim, 3 * dim), dim),
        "qkv_b": jnp.zeros((3 * dim,), jnp.float32),
        "proj_w": w(ks[1], (dim, dim), dim),
        "proj_b": jnp.zeros((dim,), jnp.float32),
        "pos": {
            "proj_w": w(ks[2], (2, pos_dim), 2),
            "proj_b": jnp.zeros((pos_dim,), jnp.float32),
            "pos1": {"ln_g": jnp.ones((pos_dim,), jnp.float32),
                     "ln_b": jnp.zeros((pos_dim,), jnp.float32),
                     "w": w(ks[3], (pos_dim, pos_dim), pos_dim),
                     "b": jnp.zeros((pos_dim,), jnp.float32)},
            "pos2": {"ln_g": jnp.ones((pos_dim,), jnp.float32),
                     "ln_b": jnp.zeros((pos_dim,), jnp.float32),
                     "w": w(ks[4], (pos_dim, pos_dim), pos_dim),
                     "b": jnp.zeros((pos_dim,), jnp.float32)},
            "pos3": {"ln_g": jnp.ones((pos_dim,), jnp.float32),
                     "ln_b": jnp.zeros((pos_dim,), jnp.float32),
                     "w": w(ks[5], (pos_dim, num_heads), pos_dim),
                     "b": jnp.zeros((num_heads,), jnp.float32)},
        },
    }


if __name__ == "__main__":
    # Small config consistent with the module: dim divisible by 16 so that
    # DynamicPosBias pos_dim = dim // 16 > 0.
    B_, H, W = 2, 4, 4
    N = H * W
    dim, num_heads = 32, 2

    key = jax.random.PRNGKey(0)
    kx, kp = jax.random.split(key)
    x = jax.random.normal(kx, (B_, N, dim), jnp.float32)
    params = init_params(kp, dim, num_heads)

    # One-time host-side preparation (scale folding, head split, position bias).
    prep = prepare_attention(params, num_heads, H, W)

    fwd = jax.jit(functools.partial(attention_fused, num_heads=num_heads))
    out = fwd(x, prep)
    jax.block_until_ready(out)

    assert out.shape == (B_, N, dim), out.shape
    assert bool(jnp.all(jnp.isfinite(out)))

    # Loose tolerance: bf16 MXU operands + approximate EUP reciprocal.
    ref = attention_reference(x, H, W, params, num_heads)
    max_err = float(jnp.max(jnp.abs(out - ref)))
    assert max_err < 1e-1, f"max abs error vs fp32 reference: {max_err}"

    print("KERNEL_OK")
</pallas_src>

<mosaic_0001>
module attributes {stable_mosaic.version = 11 : i64} {
  func.func @_fused_attn_kernel(%arg0: i32, %arg1: memref<2x16x32xf32, #tpu.memory_space<vmem>>, %arg2: memref<2x32x16xbf16, #tpu.memory_space<vmem>>, %arg3: memref<2x32x16xbf16, #tpu.memory_space<vmem>>, %arg4: memref<2x32x16xbf16, #tpu.memory_space<vmem>>, %arg5: memref<2x1x16xf32, #tpu.memory_space<vmem>>, %arg6: memref<2x1x16xf32, #tpu.memory_space<vmem>>, %arg7: memref<2x1x16xf32, #tpu.memory_space<vmem>>, %arg8: memref<2x16x32xbf16, #tpu.memory_space<vmem>>, %arg9: memref<1x32xf32, #tpu.memory_space<vmem>>, %arg10: memref<2x16x16xf32, #tpu.memory_space<vmem>>, %arg11: memref<2x16x32xf32, #tpu.memory_space<vmem>>) attributes {dimension_semantics = [#tpu.dimension_semantics<parallel>], iteration_bounds = array<i64: 1>, scalar_prefetch = 0 : i64, scratch_operands = 0 : i64, tpu.core_type = #tpu.core_type<tc>, window_params = [{transform_indices = @transform_0, window_bounds = array<i64: 2, 16, 32>}, {pipeline_mode = #tpu.pipeline_mode<synchronous>, transform_indices = @transform_1, window_bounds = array<i64: 2, 32, 16>}, {pipeline_mode = #tpu.pipeline_mode<synchronous>, transform_indices = @transform_2, window_bounds = array<i64: 2, 32, 16>}, {pipeline_mode = #tpu.pipeline_mode<synchronous>, transform_indices = @transform_3, window_bounds = array<i64: 2, 32, 16>}, {pipeline_mode = #tpu.pipeline_mode<synchronous>, transform_indices = @transform_4, window_bounds = array<i64: 2, 1, 16>}, {pipeline_mode = #tpu.pipeline_mode<synchronous>, transform_indices = @transform_5, window_bounds = array<i64: 2, 1, 16>}, {pipeline_mode = #tpu.pipeline_mode<synchronous>, transform_indices = @transform_6, window_bounds = array<i64: 2, 1, 16>}, {pipeline_mode = #tpu.pipeline_mode<synchronous>, transform_indices = @transform_7, window_bounds = array<i64: 2, 16, 32>}, {pipeline_mode = #tpu.pipeline_mode<synchronous>, transform_indices = @transform_8, window_bounds = array<i64: 1, 32>}, {pipeline_mode = #tpu.pipeline_mode<synchronous>, transform_indices = @transform_9, window_bounds = array<i64: 2, 16, 16>}, {transform_indices = @transform_10, window_bounds = array<i64: 2, 16, 32>}]} {
    %c0 = arith.constant 0 : index
    %c0_0 = arith.constant 0 : index
    %0 = vector.load %arg9[%c0, %c0_0] : memref<1x32xf32, #tpu.memory_space<vmem>>, vector<1x32xf32>
    %c0_1 = arith.constant 0 : index
    %c0_2 = arith.constant 0 : index
    %c0_3 = arith.constant 0 : index
    %1 = vector.load %arg1[%c0_1, %c0_2, %c0_3] : memref<2x16x32xf32, #tpu.memory_space<vmem>>, vector<1x16x32xf32>
    %2 = vector.shape_cast %1 : vector<1x16x32xf32> to vector<16x32xf32>
    %3 = arith.truncf %2 : vector<16x32xf32> to vector<16x32xbf16>
    %cst = arith.constant 0.000000e+00 : f32
    %4 = vector.broadcast %cst : f32 to vector<16x32xf32>
    %c0_4 = arith.constant 0 : index
    %c0_5 = arith.constant 0 : index
    %c0_6 = arith.constant 0 : index
    %5 = vector.load %arg2[%c0_4, %c0_5, %c0_6] : memref<2x32x16xbf16, #tpu.memory_space<vmem>>, vector<1x32x16xbf16>
    %6 = vector.shape_cast %5 : vector<1x32x16xbf16> to vector<32x16xbf16>
    %cst_7 = arith.constant dense<0.000000e+00> : vector<16x16xf32>
    %7 = tpu.matmul %3, %6, %cst_7 {dimension_numbers = #tpu.dot_dimension_numbers<[1], [0], [0], [1], [0, 0, 1, 1], [], []>} : vector<16x32xbf16>, vector<32x16xbf16>, vector<16x16xf32> -> vector<16x16xf32>
    %c0_8 = arith.constant 0 : index
    %c0_9 = arith.constant 0 : index
    %c0_10 = arith.constant 0 : index
    %8 = vector.load %arg5[%c0_8, %c0_9, %c0_10] : memref<2x1x16xf32, #tpu.memory_space<vmem>>, vector<1x1x16xf32>
    %9 = vector.shape_cast %8 : vector<1x1x16xf32> to vector<1x16xf32>
    %10 = vector.broadcast %9 : vector<1x16xf32> to vector<16x16xf32>
    %11 = arith.addf %7, %10 : vector<16x16xf32>
    %12 = arith.truncf %11 : vector<16x16xf32> to vector<16x16xbf16>
    %c0_11 = arith.constant 0 : index
    %c0_12 = arith.constant 0 : index
    %c0_13 = arith.constant 0 : index
    %13 = vector.load %arg3[%c0_11, %c0_12, %c0_13] : memref<2x32x16xbf16, #tpu.memory_space<vmem>>, vector<1x32x16xbf16>
    %14 = vector.shape_cast %13 : vector<1x32x16xbf16> to vector<32x16xbf16>
    %cst_14 = arith.constant dense<0.000000e+00> : vector<16x16xf32>
    %15 = tpu.matmul %3, %14, %cst_14 {dimension_numbers = #tpu.dot_dimension_numbers<[1], [0], [0], [1], [0, 0, 1, 1], [], []>} : vector<16x32xbf16>, vector<32x16xbf16>, vector<16x16xf32> -> vector<16x16xf32>
    %c0_15 = arith.constant 0 : index
    %c0_16 = arith.constant 0 : index
    %c0_17 = arith.constant 0 : index
    %16 = vector.load %arg6[%c0_15, %c0_16, %c0_17] : memref<2x1x16xf32, #tpu.memory_space<vmem>>, vector<1x1x16xf32>
    %17 = vector.shape_cast %16 : vector<1x1x16xf32> to vector<1x16xf32>
    %18 = vector.broadcast %17 : vector<1x16xf32> to vector<16x16xf32>
    %19 = arith.addf %15, %18 : vector<16x16xf32>
    %20 = arith.truncf %19 : vector<16x16xf32> to vector<16x16xbf16>
    %c0_18 = arith.constant 0 : index
    %c0_19 = arith.constant 0 : index
    %c0_20 = arith.constant 0 : index
    %21 = vector.load %arg4[%c0_18, %c0_19, %c0_20] : memref<2x32x16xbf16, #tpu.memory_space<vmem>>, vector<1x32x16xbf16>
    %22 = vector.shape_cast %21 : vector<1x32x16xbf16> to vector<32x16xbf16>
    %cst_21 = arith.constant dense<0.000000e+00> : vector<16x16xf32>
    %23 = tpu.matmul %3, %22, %cst_21 {dimension_numbers = #tpu.dot_dimension_numbers<[1], [0], [0], [1], [0, 0, 1, 1], [], []>} : vector<16x32xbf16>, vector<32x16xbf16>, vector<16x16xf32> -> vector<16x16xf32>
    %c0_22 = arith.constant 0 : index
    %c0_23 = arith.constant 0 : index
    %c0_24 = arith.constant 0 : index
    %24 = vector.load %arg7[%c0_22, %c0_23, %c0_24] : memref<2x1x16xf32, #tpu.memory_space<vmem>>, vector<1x1x16xf32>
    %25 = vector.shape_cast %24 : vector<1x1x16xf32> to vector<1x16xf32>
    %26 = vector.broadcast %25 : vector<1x16xf32> to vector<16x16xf32>
    %27 = arith.addf %23, %26 : vector<16x16xf32>
    %28 = arith.truncf %27 : vector<16x16xf32> to vector<16x16xbf16>
    %cst_25 = arith.constant dense<0.000000e+00> : vector<16x16xf32>
    %29 = tpu.matmul %12, %20, %cst_25 {dimension_numbers = #tpu.dot_dimension_numbers<[1], [1], [0], [0], [0, 0, 1, 0], [], []>} : vector<16x16xbf16>, vector<16x16xbf16>, vector<16x16xf32> -> vector<16x16xf32>
    %c0_26 = arith.constant 0 : index
    %c0_27 = arith.constant 0 : index
    %c0_28 = arith.constant 0 : index
    %30 = vector.load %arg10[%c0_26, %c0_27, %c0_28] : memref<2x16x16xf32, #tpu.memory_space<vmem>>, vector<1x16x16xf32>
    %31 = vector.shape_cast %30 : vector<1x16x16xf32> to vector<16x16xf32>
    %32 = arith.addf %29, %31 : vector<16x16xf32>
    %cst_29 = arith.constant dense<0xFF800000> : vector<16xf32>
    %33 = vector.multi_reduction <maximumf>, %32, %cst_29 [1] : vector<16x16xf32> to vector<16xf32>
    %34 = vector.shape_cast %33 : vector<16xf32> to vector<16x1xf32>
    %35 = vector.broadcast %34 : vector<16x1xf32> to vector<16x16xf32>
    %36 = arith.subf %32, %35 : vector<16x16xf32>
    %37 = math.exp %36 : vector<16x16xf32>
    %cst_30 = arith.constant dense<0.000000e+00> : vector<16xf32>
    %38 = vector.multi_reduction <add>, %37, %cst_30 [1] : vector<16x16xf32> to vector<16xf32>
    %39 = vector.shape_cast %38 : vector<16xf32> to vector<16x1xf32>
    %40 = arith.truncf %37 : vector<16x16xf32> to vector<16x16xbf16>
    %cst_31 = arith.constant dense<0.000000e+00> : vector<16x16xf32>
    %41 = tpu.matmul %40, %28, %cst_31 {dimension_numbers = #tpu.dot_dimension_numbers<[1], [0], [0], [1], [0, 0, 1, 1], [], []>} : vector<16x16xbf16>, vector<16x16xbf16>, vector<16x16xf32> -> vector<16x16xf32>
    %42 = tpu.reciprocal %39 {approx = true} : vector<16x1xf32> -> vector<16x1xf32>
    %43 = vector.broadcast %42 : vector<16x1xf32> to vector<16x16xf32>
    %44 = arith.mulf %41, %43 : vector<16x16xf32>
    %45 = arith.truncf %44 : vector<16x16xf32> to vector<16x16xbf16>
    %c0_32 = arith.constant 0 : index
    %c0_33 = arith.constant 0 : index
    %c0_34 = arith.constant 0 : index
    %46 = vector.load %arg8[%c0_32, %c0_33, %c0_34] : memref<2x16x32xbf16, #tpu.memory_space<vmem>>, vector<1x16x32xbf16>
    %47 = vector.shape_cast %46 : vector<1x16x32xbf16> to vector<16x32xbf16>
    %cst_35 = arith.constant dense<0.000000e+00> : vector<16x32xf32>
    %48 = tpu.matmul %45, %47, %cst_35 {dimension_numbers = #tpu.dot_dimension_numbers<[1], [0], [0], [1], [0, 0, 1, 1], [], []>} : vector<16x16xbf16>, vector<16x32xbf16>, vector<16x32xf32> -> vector<16x32xf32>
    %49 = arith.addf %4, %48 : vector<16x32xf32>
    %c1 = arith.constant 1 : index
    %c0_36 = arith.constant 0 : index
    %c0_37 = arith.constant 0 : index
    %50 = vector.load %arg2[%c1, %c0_36, %c0_37] : memref<2x32x16xbf16, #tpu.memory_space<vmem>>, vector<1x32x16xbf16>
    %51 = vector.shape_cast %50 : vector<1x32x16xbf16> to vector<32x16xbf16>
    %cst_38 = arith.constant dense<0.000000e+00> : vector<16x16xf32>
    %52 = tpu.matmul %3, %51, %cst_38 {dimension_numbers = #tpu.dot_dimension_numbers<[1], [0], [0], [1], [0, 0, 1, 1], [], []>} : vector<16x32xbf16>, vector<32x16xbf16>, vector<16x16xf32> -> vector<16x16xf32>
    %c1_39 = arith.constant 1 : index
    %c0_40 = arith.constant 0 : index
    %c0_41 = arith.constant 0 : index
    %53 = vector.load %arg5[%c1_39, %c0_40, %c0_41] : memref<2x1x16xf32, #tpu.memory_space<vmem>>, vector<1x1x16xf32>
    %54 = vector.shape_cast %53 : vector<1x1x16xf32> to vector<1x16xf32>
    %55 = vector.broadcast %54 : vector<1x16xf32> to vector<16x16xf32>
    %56 = arith.addf %52, %55 : vector<16x16xf32>
    %57 = arith.truncf %56 : vector<16x16xf32> to vector<16x16xbf16>
    %c1_42 = arith.constant 1 : index
    %c0_43 = arith.constant 0 : index
    %c0_44 = arith.constant 0 : index
    %58 = vector.load %arg3[%c1_42, %c0_43, %c0_44] : memref<2x32x16xbf16, #tpu.memory_space<vmem>>, vector<1x32x16xbf16>
    %59 = vector.shape_cast %58 : vector<1x32x16xbf16> to vector<32x16xbf16>
    %cst_45 = arith.constant dense<0.000000e+00> : vector<16x16xf32>
    %60 = tpu.matmul %3, %59, %cst_45 {dimension_numbers = #tpu.dot_dimension_numbers<[1], [0], [0], [1], [0, 0, 1, 1], [], []>} : vector<16x32xbf16>, vector<32x16xbf16>, vector<16x16xf32> -> vector<16x16xf32>
    %c1_46 = arith.constant 1 : index
    %c0_47 = arith.constant 0 : index
    %c0_48 = arith.constant 0 : index
    %61 = vector.load %arg6[%c1_46, %c0_47, %c0_48] : memref<2x1x16xf32, #tpu.memory_space<vmem>>, vector<1x1x16xf32>
    %62 = vector.shape_cast %61 : vector<1x1x16xf32> to vector<1x16xf32>
    %63 = vector.broadcast %62 : vector<1x16xf32> to vector<16x16xf32>
    %64 = arith.addf %60, %63 : vector<16x16xf32>
    %65 = arith.truncf %64 : vector<16x16xf32> to vector<16x16xbf16>
    %c1_49 = arith.constant 1 : index
    %c0_50 = arith.constant 0 : index
    %c0_51 = arith.constant 0 : index
    %66 = vector.load %arg4[%c1_49, %c0_50, %c0_51] : memref<2x32x16xbf16, #tpu.memory_space<vmem>>, vector<1x32x16xbf16>
    %67 = vector.shape_cast %66 : vector<1x32x16xbf16> to vector<32x16xbf16>
    %cst_52 = arith.constant dense<0.000000e+00> : vector<16x16xf32>
    %68 = tpu.matmul %3, %67, %cst_52 {dimension_numbers = #tpu.dot_dimension_numbers<[1], [0], [0], [1], [0, 0, 1, 1], [], []>} : vector<16x32xbf16>, vector<32x16xbf16>, vector<16x16xf32> -> vector<16x16xf32>
    %c1_53 = arith.constant 1 : index
    %c0_54 = arith.constant 0 : index
    %c0_55 = arith.constant 0 : index
    %69 = vector.load %arg7[%c1_53, %c0_54, %c0_55] : memref<2x1x16xf32, #tpu.memory_space<vmem>>, vector<1x1x16xf32>
    %70 = vector.shape_cast %69 : vector<1x1x16xf32> to vector<1x16xf32>
    %71 = vector.broadcast %70 : vector<1x16xf32> to vector<16x16xf32>
    %72 = arith.addf %68, %71 : vector<16x16xf32>
    %73 = arith.truncf %72 : vector<16x16xf32> to vector<16x16xbf16>
    %cst_56 = arith.constant dense<0.000000e+00> : vector<16x16xf32>
    %74 = tpu.matmul %57, %65, %cst_56 {dimension_numbers = #tpu.dot_dimension_numbers<[1], [1], [0], [0], [0, 0, 1, 0], [], []>} : vector<16x16xbf16>, vector<16x16xbf16>, vector<16x16xf32> -> vector<16x16xf32>
    %c1_57 = arith.constant 1 : index
    %c0_58 = arith.constant 0 : index
    %c0_59 = arith.constant 0 : index
    %75 = vector.load %arg10[%c1_57, %c0_58, %c0_59] : memref<2x16x16xf32, #tpu.memory_space<vmem>>, vector<1x16x16xf32>
    %76 = vector.shape_cast %75 : vector<1x16x16xf32> to vector<16x16xf32>
    %77 = arith.addf %74, %76 : vector<16x16xf32>
    %cst_60 = arith.constant dense<0xFF800000> : vector<16xf32>
    %78 = vector.multi_reduction <maximumf>, %77, %cst_60 [1] : vector<16x16xf32> to vector<16xf32>
    %79 = vector.shape_cast %78 : vector<16xf32> to vector<16x1xf32>
    %80 = vector.broadcast %79 : vector<16x1xf32> to vector<16x16xf32>
    %81 = arith.subf %77, %80 : vector<16x16xf32>
    %82 = math.exp %81 : vector<16x16xf32>
    %cst_61 = arith.constant dense<0.000000e+00> : vector<16xf32>
    %83 = vector.multi_reduction <add>, %82, %cst_61 [1] : vector<16x16xf32> to vector<16xf32>
    %84 = vector.shape_cast %83 : vector<16xf32> to vector<16x1xf32>
    %85 = arith.truncf %82 : vector<16x16xf32> to vector<16x16xbf16>
    %cst_62 = arith.constant dense<0.000000e+00> : vector<16x16xf32>
    %86 = tpu.matmul %85, %73, %cst_62 {dimension_numbers = #tpu.dot_dimension_numbers<[1], [0], [0], [1], [0, 0, 1, 1], [], []>} : vector<16x16xbf16>, vector<16x16xbf16>, vector<16x16xf32> -> vector<16x16xf32>
    %87 = tpu.reciprocal %84 {approx = true} : vector<16x1xf32> -> vector<16x1xf32>
    %88 = vector.broadcast %87 : vector<16x1xf32> to vector<16x16xf32>
    %89 = arith.mulf %86, %88 : vector<16x16xf32>
    %90 = arith.truncf %89 : vector<16x16xf32> to vector<16x16xbf16>
    %c1_63 = arith.constant 1 : index
    %c0_64 = arith.constant 0 : index
    %c0_65 = arith.constant 0 : index
    %91 = vector.load %arg8[%c1_63, %c0_64, %c0_65] : memref<2x16x32xbf16, #tpu.memory_space<vmem>>, vector<1x16x32xbf16>
    %92 = vector.shape_cast %91 : vector<1x16x32xbf16> to vector<16x32xbf16>
    %cst_66 = arith.constant dense<0.000000e+00> : vector<16x32xf32>
    %93 = tpu.matmul %90, %92, %cst_66 {dimension_numbers = #tpu.dot_dimension_numbers<[1], [0], [0], [1], [0, 0, 1, 1], [], []>} : vector<16x16xbf16>, vector<16x32xbf16>, vector<16x32xf32> -> vector<16x32xf32>
    %94 = arith.addf %49, %93 : vector<16x32xf32>
    %95 = vector.broadcast %0 : vector<1x32xf32> to vector<16x32xf32>
    %96 = arith.addf %94, %95 : vector<16x32xf32>
    %c0_67 = arith.constant 0 : index
    %c0_68 = arith.constant 0 : index
    %c0_69 = arith.constant 0 : index
    %97 = vector.load %arg11[%c0_67, %c0_68, %c0_69] : memref<2x16x32xf32, #tpu.memory_space<vmem>>, vector<1x16x32xf32>
    %98 = vector.shape_cast %97 : vector<1x16x32xf32> to vector<16x32xf32>
    %99 = vector.shape_cast %96 : vector<16x32xf32> to vector<1x16x32xf32>
    tpu.vector_store %arg11[%c0_67, %c0_68, %c0_69], %99 {strides = array<i32>} : memref<2x16x32xf32, #tpu.memory_space<vmem>>, vector<1x16x32xf32>,
    %c1_70 = arith.constant 1 : index
    %c0_71 = arith.constant 0 : index
    %c0_72 = arith.constant 0 : index
    %100 = vector.load %arg1[%c1_70, %c0_71, %c0_72] : memref<2x16x32xf32, #tpu.memory_space<vmem>>, vector<1x16x32xf32>
    %101 = vector.shape_cast %100 : vector<1x16x32xf32> to vector<16x32xf32>
    %102 = arith.truncf %101 : vector<16x32xf32> to vector<16x32xbf16>
    %cst_73 = arith.constant 0.000000e+00 : f32
    %103 = vector.broadcast %cst_73 : f32 to vector<16x32xf32>
    %c0_74 = arith.constant 0 : index
    %c0_75 = arith.constant 0 : index
    %c0_76 = arith.constant 0 : index
    %104 = vector.load %arg2[%c0_74, %c0_75, %c0_76] : memref<2x32x16xbf16, #tpu.memory_space<vmem>>, vector<1x32x16xbf16>
    %105 = vector.shape_cast %104 : vector<1x32x16xbf16> to vector<32x16xbf16>
    %cst_77 = arith.constant dense<0.000000e+00> : vector<16x16xf32>
    %106 = tpu.matmul %102, %105, %cst_77 {dimension_numbers = #tpu.dot_dimension_numbers<[1], [0], [0], [1], [0, 0, 1, 1], [], []>} : vector<16x32xbf16>, vector<32x16xbf16>, vector<16x16xf32> -> vector<16x16xf32>
    %c0_78 = arith.constant 0 : index
    %c0_79 = arith.constant 0 : index
    %c0_80 = arith.constant 0 : index
    %107 = vector.load %arg5[%c0_78, %c0_79, %c0_80] : memref<2x1x16xf32, #tpu.memory_space<vmem>>, vector<1x1x16xf32>
    %108 = vector.shape_cast %107 : vector<1x1x16xf32> to vector<1x16xf32>
    %109 = vector.broadcast %108 : vector<1x16xf32> to vector<16x16xf32>
    %110 = arith.addf %106, %109 : vector<16x16xf32>
    %111 = arith.truncf %110 : vector<16x16xf32> to vector<16x16xbf16>
    %c0_81 = arith.constant 0 : index
    %c0_82 = arith.constant 0 : index
    %c0_83 = arith.constant 0 : index
    %112 = vector.load %arg3[%c0_81, %c0_82, %c0_83] : memref<2x32x16xbf16, #tpu.memory_space<vmem>>, vector<1x32x16xbf16>
    %113 = vector.shape_cast %112 : vector<1x32x16xbf16> to vector<32x16xbf16>
    %cst_84 = arith.constant dense<0.000000e+00> : vector<16x16xf32>
    %114 = tpu.matmul %102, %113, %cst_84 {dimension_numbers = #tpu.dot_dimension_numbers<[1], [0], [0], [1], [0, 0, 1, 1], [], []>} : vector<16x32xbf16>, vector<32x16xbf16>, vector<16x16xf32> -> vector<16x16xf32>
    %c0_85 = arith.constant 0 : index
    %c0_86 = arith.constant 0 : index
    %c0_87 = arith.constant 0 : index
    %115 = vector.load %arg6[%c0_85, %c0_86, %c0_87] : memref<2x1x16xf32, #tpu.memory_space<vmem>>, vector<1x1x16xf32>
    %116 = vector.shape_cast %115 : vector<1x1x16xf32> to vector<1x16xf32>
    %117 = vector.broadcast %116 : vector<1x16xf32> to vector<16x16xf32>
    %118 = arith.addf %114, %117 : vector<16x16xf32>
    %119 = arith.truncf %118 : vector<16x16xf32> to vector<16x16xbf16>
    %c0_88 = arith.constant 0 : index
    %c0_89 = arith.constant 0 : index
    %c0_90 = arith.constant 0 : index
    %120 = vector.load %arg4[%c0_88, %c0_89, %c0_90] : memref<2x32x16xbf16, #tpu.memory_space<vmem>>, vector<1x32x16xbf16>
    %121 = vector.shape_cast %120 : vector<1x32x16xbf16> to vector<32x16xbf16>
    %cst_91 = arith.constant dense<0.000000e+00> : vector<16x16xf32>
    %122 = tpu.matmul %102, %121, %cst_91 {dimension_numbers = #tpu.dot_dimension_numbers<[1], [0], [0], [1], [0, 0, 1, 1], [], []>} : vector<16x32xbf16>, vector<32x16xbf16>, vector<16x16xf32> -> vector<16x16xf32>
    %c0_92 = arith.constant 0 : index
    %c0_93 = arith.constant 0 : index
    %c0_94 = arith.constant 0 : index
    %123 = vector.load %arg7[%c0_92, %c0_93, %c0_94] : memref<2x1x16xf32, #tpu.memory_space<vmem>>, vector<1x1x16xf32>
    %124 = vector.shape_cast %123 : vector<1x1x16xf32> to vector<1x16xf32>
    %125 = vector.broadcast %124 : vector<1x16xf32> to vector<16x16xf32>
    %126 = arith.addf %122, %125 : vector<16x16xf32>
    %127 = arith.truncf %126 : vector<16x16xf32> to vector<16x16xbf16>
    %cst_95 = arith.constant dense<0.000000e+00> : vector<16x16xf32>
    %128 = tpu.matmul %111, %119, %cst_95 {dimension_numbers = #tpu.dot_dimension_numbers<[1], [1], [0], [0], [0, 0, 1, 0], [], []>} : vector<16x16xbf16>, vector<16x16xbf16>, vector<16x16xf32> -> vector<16x16xf32>
    %c0_96 = arith.constant 0 : index
    %c0_97 = arith.constant 0 : index
    %c0_98 = arith.constant 0 : index
    %129 = vector.load %arg10[%c0_96, %c0_97, %c0_98] : memref<2x16x16xf32, #tpu.memory_space<vmem>>, vector<1x16x16xf32>
    %130 = vector.shape_cast %129 : vector<1x16x16xf32> to vector<16x16xf32>
    %131 = arith.addf %128, %130 : vector<16x16xf32>
    %cst_99 = arith.constant dense<0xFF800000> : vector<16xf32>
    %132 = vector.multi_reduction <maximumf>, %131, %cst_99 [1] : vector<16x16xf32> to vector<16xf32>
    %133 = vector.shape_cast %132 : vector<16xf32> to vector<16x1xf32>
    %134 = vector.broadcast %133 : vector<16x1xf32> to vector<16x16xf32>
    %135 = arith.subf %131, %134 : vector<16x16xf32>
    %136 = math.exp %135 : vector<16x16xf32>
    %cst_100 = arith.constant dense<0.000000e+00> : vector<16xf32>
    %137 = vector.multi_reduction <add>, %136, %cst_100 [1] : vector<16x16xf32> to vector<16xf32>
    %138 = vector.shape_cast %137 : vector<16xf32> to vector<16x1xf32>
    %139 = arith.truncf %136 : vector<16x16xf32> to vector<16x16xbf16>
    %cst_101 = arith.constant dense<0.000000e+00> : vector<16x16xf32>
    %140 = tpu.matmul %139, %127, %cst_101 {dimension_numbers = #tpu.dot_dimension_numbers<[1], [0], [0], [1], [0, 0, 1, 1], [], []>} : vector<16x16xbf16>, vector<16x16xbf16>, vector<16x16xf32> -> vector<16x16xf32>
    %141 = tpu.reciprocal %138 {approx = true} : vector<16x1xf32> -> vector<16x1xf32>
    %142 = vector.broadcast %141 : vector<16x1xf32> to vector<16x16xf32>
    %143 = arith.mulf %140, %142 : vector<16x16xf32>
    %144 = arith.truncf %143 : vector<16x16xf32> to vector<16x16xbf16>
    %c0_102 = arith.constant 0 : index
    %c0_103 = arith.constant 0 : index
    %c0_104 = arith.constant 0 : index
    %145 = vector.load %arg8[%c0_102, %c0_103, %c0_104] : memref<2x16x32xbf16, #tpu.memory_space<vmem>>, vector<1x16x32xbf16>
    %146 = vector.shape_cast %145 : vector<1x16x32xbf16> to vector<16x32xbf16>
    %cst_105 = arith.constant dense<0.000000e+00> : vector<16x32xf32>
    %147 = tpu.matmul %144, %146, %cst_105 {dimension_numbers = #tpu.dot_dimension_numbers<[1], [0], [0], [1], [0, 0, 1, 1], [], []>} : vector<16x16xbf16>, vector<16x32xbf16>, vector<16x32xf32> -> vector<16x32xf32>
    %148 = arith.addf %103, %147 : vector<16x32xf32>
    %c1_106 = arith.constant 1 : index
    %c0_107 = arith.constant 0 : index
    %c0_108 = arith.constant 0 : index
    %149 = vector.load %arg2[%c1_106, %c0_107, %c0_108] : memref<2x32x16xbf16, #tpu.memory_space<vmem>>, vector<1x32x16xbf16>
    %150 = vector.shape_cast %149 : vector<1x32x16xbf16> to vector<32x16xbf16>
    %cst_109 = arith.constant dense<0.000000e+00> : vector<16x16xf32>
    %151 = tpu.matmul %102, %150, %cst_109 {dimension_numbers = #tpu.dot_dimension_numbers<[1], [0], [0], [1], [0, 0, 1, 1], [], []>} : vector<16x32xbf16>, vector<32x16xbf16>, vector<16x16xf32> -> vector<16x16xf32>
    %c1_110 = arith.constant 1 : index
    %c0_111 = arith.constant 0 : index
    %c0_112 = arith.constant 0 : index
    %152 = vector.load %arg5[%c1_110, %c0_111, %c0_112] : memref<2x1x16xf32, #tpu.memory_space<vmem>>, vector<1x1x16xf32>
    %153 = vector.shape_cast %152 : vector<1x1x16xf32> to vector<1x16xf32>
    %154 = vector.broadcast %153 : vector<1x16xf32> to vector<16x16xf32>
    %155 = arith.addf %151, %154 : vector<16x16xf32>
    %156 = arith.truncf %155 : vector<16x16xf32> to vector<16x16xbf16>
    %c1_113 = arith.constant 1 : index
    %c0_114 = arith.constant 0 : index
    %c0_115 = arith.constant 0 : index
    %157 = vector.load %arg3[%c1_113, %c0_114, %c0_115] : memref<2x32x16xbf16, #tpu.memory_space<vmem>>, vector<1x32x16xbf16>
    %158 = vector.shape_cast %157 : vector<1x32x16xbf16> to vector<32x16xbf16>
    %cst_116 = arith.constant dense<0.000000e+00> : vector<16x16xf32>
    %159 = tpu.matmul %102, %158, %cst_116 {dimension_numbers = #tpu.dot_dimension_numbers<[1], [0], [0], [1], [0, 0, 1, 1], [], []>} : vector<16x32xbf16>, vector<32x16xbf16>, vector<16x16xf32> -> vector<16x16xf32>
    %c1_117 = arith.constant 1 : index
    %c0_118 = arith.constant 0 : index
    %c0_119 = arith.constant 0 : index
    %160 = vector.load %arg6[%c1_117, %c0_118, %c0_119] : memref<2x1x16xf32, #tpu.memory_space<vmem>>, vector<1x1x16xf32>
    %161 = vector.shape_cast %160 : vector<1x1x16xf32> to vector<1x16xf32>
    %162 = vector.broadcast %161 : vector<1x16xf32> to vector<16x16xf32>
    %163 = arith.addf %159, %162 : vector<16x16xf32>
    %164 = arith.truncf %163 : vector<16x16xf32> to vector<16x16xbf16>
    %c1_120 = arith.constant 1 : index
    %c0_121 = arith.constant 0 : index
    %c0_122 = arith.constant 0 : index
    %165 = vector.load %arg4[%c1_120, %c0_121, %c0_122] : memref<2x32x16xbf16, #tpu.memory_space<vmem>>, vector<1x32x16xbf16>
    %166 = vector.shape_cast %165 : vector<1x32x16xbf16> to vector<32x16xbf16>
    %cst_123 = arith.constant dense<0.000000e+00> : vector<16x16xf32>
    %167 = tpu.matmul %102, %166, %cst_123 {dimension_numbers = #tpu.dot_dimension_numbers<[1], [0], [0], [1], [0, 0, 1, 1], [], []>} : vector<16x32xbf16>, vector<32x16xbf16>, vector<16x16xf32> -> vector<16x16xf32>
    %c1_124 = arith.constant 1 : index
    %c0_125 = arith.constant 0 : index
    %c0_126 = arith.constant 0 : index
    %168 = vector.load %arg7[%c1_124, %c0_125, %c0_126] : memref<2x1x16xf32, #tpu.memory_space<vmem>>, vector<1x1x16xf32>
    %169 = vector.shape_cast %168 : vector<1x1x16xf32> to vector<1x16xf32>
    %170 = vector.broadcast %169 : vector<1x16xf32> to vector<16x16xf32>
    %171 = arith.addf %167, %170 : vector<16x16xf32>
    %172 = arith.truncf %171 : vector<16x16xf32> to vector<16x16xbf16>
    %cst_127 = arith.constant dense<0.000000e+00> : vector<16x16xf32>
    %173 = tpu.matmul %156, %164, %cst_127 {dimension_numbers = #tpu.dot_dimension_numbers<[1], [1], [0], [0], [0, 0, 1, 0], [], []>} : vector<16x16xbf16>, vector<16x16xbf16>, vector<16x16xf32> -> vector<16x16xf32>
    %c1_128 = arith.constant 1 : index
    %c0_129 = arith.constant 0 : index
    %c0_130 = arith.constant 0 : index
    %174 = vector.load %arg10[%c1_128, %c0_129, %c0_130] : memref<2x16x16xf32, #tpu.memory_space<vmem>>, vector<1x16x16xf32>
    %175 = vector.shape_cast %174 : vector<1x16x16xf32> to vector<16x16xf32>
    %176 = arith.addf %173, %175 : vector<16x16xf32>
    %cst_131 = arith.constant dense<0xFF800000> : vector<16xf32>
    %177 = vector.multi_reduction <maximumf>, %176, %cst_131 [1] : vector<16x16xf32> to vector<16xf32>
    %178 = vector.shape_cast %177 : vector<16xf32> to vector<16x1xf32>
    %179 = vector.broadcast %178 : vector<16x1xf32> to vector<16x16xf32>
    %180 = arith.subf %176, %179 : vector<16x16xf32>
    %181 = math.exp %180 : vector<16x16xf32>
    %cst_132 = arith.constant dense<0.000000e+00> : vector<16xf32>
    %182 = vector.multi_reduction <add>, %181, %cst_132 [1] : vector<16x16xf32> to vector<16xf32>
    %183 = vector.shape_cast %182 : vector<16xf32> to vector<16x1xf32>
    %184 = arith.truncf %181 : vector<16x16xf32> to vector<16x16xbf16>
    %cst_133 = arith.constant dense<0.000000e+00> : vector<16x16xf32>
    %185 = tpu.matmul %184, %172, %cst_133 {dimension_numbers = #tpu.dot_dimension_numbers<[1], [0], [0], [1], [0, 0, 1, 1], [], []>} : vector<16x16xbf16>, vector<16x16xbf16>, vector<16x16xf32> -> vector<16x16xf32>
    %186 = tpu.reciprocal %183 {approx = true} : vector<16x1xf32> -> vector<16x1xf32>
    %187 = vector.broadcast %186 : vector<16x1xf32> to vector<16x16xf32>
    %188 = arith.mulf %185, %187 : vector<16x16xf32>
    %189 = arith.truncf %188 : vector<16x16xf32> to vector<16x16xbf16>
    %c1_134 = arith.constant 1 : index
    %c0_135 = arith.constant 0 : index
    %c0_136 = arith.constant 0 : index
    %190 = vector.load %arg8[%c1_134, %c0_135, %c0_136] : memref<2x16x32xbf16, #tpu.memory_space<vmem>>, vector<1x16x32xbf16>
    %191 = vector.shape_cast %190 : vector<1x16x32xbf16> to vector<16x32xbf16>
    %cst_137 = arith.constant dense<0.000000e+00> : vector<16x32xf32>
    %192 = tpu.matmul %189, %191, %cst_137 {dimension_numbers = #tpu.dot_dimension_numbers<[1], [0], [0], [1], [0, 0, 1, 1], [], []>} : vector<16x16xbf16>, vector<16x32xbf16>, vector<16x32xf32> -> vector<16x32xf32>
    %193 = arith.addf %148, %192 : vector<16x32xf32>
    %194 = vector.broadcast %0 : vector<1x32xf32> to vector<16x32xf32>
    %195 = arith.addf %193, %194 : vector<16x32xf32>
    %c1_138 = arith.constant 1 : index
    %c0_139 = arith.constant 0 : index
    %c0_140 = arith.constant 0 : index
    %196 = vector.load %arg11[%c1_138, %c0_139, %c0_140] : memref<2x16x32xf32, #tpu.memory_space<vmem>>, vector<1x16x32xf32>
    %197 = vector.shape_cast %196 : vector<1x16x32xf32> to vector<16x32xf32>
    %198 = vector.shape_cast %195 : vector<16x32xf32> to vector<1x16x32xf32>
    tpu.vector_store %arg11[%c1_138, %c0_139, %c0_140], %198 {strides = array<i32>} : memref<2x16x32xf32, #tpu.memory_space<vmem>>, vector<1x16x32xf32>,
    return
  }
  func.func @transform_0(%arg0: i32) -> (i32, i32, i32) {
    %c0_i32 = arith.constant 0 : i32
    %c0_i32_0 = arith.constant 0 : i32
    %c0_i32_1 = arith.constant 0 : i32
    return %arg0, %c0_i32, %c0_i32_0 : i32, i32, i32
  }
  func.func @transform_1(%arg0: i32) -> (i32, i32, i32) {
    %c0_i32 = arith.constant 0 : i32
    %c0_i32_0 = arith.constant 0 : i32
    %c0_i32_1 = arith.constant 0 : i32
    %c0_i32_2 = arith.constant 0 : i32
    return %c0_i32, %c0_i32_0, %c0_i32_1 : i32, i32, i32
  }
  func.func @transform_2(%arg0: i32) -> (i32, i32, i32) {
    %c0_i32 = arith.constant 0 : i32
    %c0_i32_0 = arith.constant 0 : i32
    %c0_i32_1 = arith.constant 0 : i32
    %c0_i32_2 = arith.constant 0 : i32
    return %c0_i32, %c0_i32_0, %c0_i32_1 : i32, i32, i32
  }
  func.func @transform_3(%arg0: i32) -> (i32, i32, i32) {
    %c0_i32 = arith.constant 0 : i32
    %c0_i32_0 = arith.constant 0 : i32
    %c0_i32_1 = arith.constant 0 : i32
    %c0_i32_2 = arith.constant 0 : i32
    return %c0_i32, %c0_i32_0, %c0_i32_1 : i32, i32, i32
  }
  func.func @transform_4(%arg0: i32) -> (i32, i32, i32) {
    %c0_i32 = arith.constant 0 : i32
    %c0_i32_0 = arith.constant 0 : i32
    %c0_i32_1 = arith.constant 0 : i32
    %c0_i32_2 = arith.constant 0 : i32
    return %c0_i32, %c0_i32_0, %c0_i32_1 : i32, i32, i32
  }
  func.func @transform_5(%arg0: i32) -> (i32, i32, i32) {
    %c0_i32 = arith.constant 0 : i32
    %c0_i32_0 = arith.constant 0 : i32
    %c0_i32_1 = arith.constant 0 : i32
    %c0_i32_2 = arith.constant 0 : i32
    return %c0_i32, %c0_i32_0, %c0_i32_1 : i32, i32, i32
  }
  func.func @transform_6(%arg0: i32) -> (i32, i32, i32) {
    %c0_i32 = arith.constant 0 : i32
    %c0_i32_0 = arith.constant 0 : i32
    %c0_i32_1 = arith.constant 0 : i32
    %c0_i32_2 = arith.constant 0 : i32
    return %c0_i32, %c0_i32_0, %c0_i32_1 : i32, i32, i32
  }
  func.func @transform_7(%arg0: i32) -> (i32, i32, i32) {
    %c0_i32 = arith.constant 0 : i32
    %c0_i32_0 = arith.constant 0 : i32
    %c0_i32_1 = arith.constant 0 : i32
    %c0_i32_2 = arith.constant 0 : i32
    return %c0_i32, %c0_i32_0, %c0_i32_1 : i32, i32, i32
  }
  func.func @transform_8(%arg0: i32) -> (i32, i32) {
    %c0_i32 = arith.constant 0 : i32
    %c0_i32_0 = arith.constant 0 : i32
    %c0_i32_1 = arith.constant 0 : i32
    return %c0_i32, %c0_i32_0 : i32, i32
  }
  func.func @transform_9(%arg0: i32) -> (i32, i32, i32) {
    %c0_i32 = arith.constant 0 : i32
    %c0_i32_0 = arith.constant 0 : i32
    %c0_i32_1 = arith.constant 0 : i32
    %c0_i32_2 = arith.constant 0 : i32
    return %c0_i32, %c0_i32_0, %c0_i32_1 : i32, i32, i32
  }
  func.func @transform_10(%arg0: i32) -> (i32, i32, i32) {
    %c0_i32 = arith.constant 0 : i32
    %c0_i32_0 = arith.constant 0 : i32
    %c0_i32_1 = arith.constant 0 : i32
    return %arg0, %c0_i32, %c0_i32_0 : i32, i32, i32
  }
}

</mosaic_0001>

<bundles_post_ra>
// kernel: attention_fused.1
= control target key start
LH: loop header
LB: loop body
LE: loop exit
PB: predicated region body
PF: predicated region fallthrough
CT: control target
= control target key end

     0   :  { %vm61_vm0 = vcmask 261120   ;;  %s1435_s0 = inlined_call_operand.vmem [shape: f32[2,16,32], index: 0, kind: input, shape index: {}]   ;;  %s1436_s1 = inlined_call_operand.vmem [shape: bf16[2,32,16], index: 1, kind: input, shape index: {}]   ;;  %s1437_s2 = inlined_call_operand.vmem [shape: bf16[2,32,16], index: 2, kind: input, shape index: {}]   ;;  %s1438_s3 = inlined_call_operand.vmem [shape: bf16[2,32,16], index: 3, kind: input, shape index: {}]   ;;  %s1439_s4 = inlined_call_operand.vmem [shape: f32[2,1,16], index: 4, kind: input, shape index: {}]   ;;  %s1440_s5 = inlined_call_operand.vmem [shape: f32[2,1,16], index: 5, kind: input, shape index: {}]   ;;  %s1441_s6 = inlined_call_operand.vmem [shape: f32[2,1,16], index: 6, kind: input, shape index: {}]   ;;  %s1442_s7 = inlined_call_operand.vmem [shape: bf16[2,16,32], index: 7, kind: input, shape index: {}]   ;;  %s1443_s8 = inlined_call_operand.vmem [shape: f32[1,32], index: 8, kind: input, shape index: {}]   ;;  %s1444_s9 = inlined_call_operand.vmem [shape: f32[2,16,16], index: 9, kind: input, shape index: {}]   ;;  %s1445_s10 = inlined_call_operand.hbm [shape: f32[2,16,32], index: 10, kind: output, shape index: {}]  }
   0x1   :  { %v1040_v0 = vld [vmem:[%s1436_s1 + $0x8] sm:$0xff]  ;;  %v1039_v2 = vld [vmem:[%s1436_s1] sm:$0xff] }
   0x2   :  { %v1042_v1 = vld [vmem:[%s1437_s2 + $0x8] sm:$0xff]  ;;  %v1041_v3 = vld [vmem:[%s1437_s2] sm:$0xff]  ;;  %71 = vmatpush.bf16.msra.mxu0 %v1040_v0 }
   0x3   :  { %v38_v4 = vld [vmem:[%s1435_s0] sm:$0xff]  ;;  %106 = vmatpush.bf16.msra.mxu1 %v1042_v1  ;;  %v39_v5 = vld [vmem:[%s1435_s0 + $0x8] sm:$0xff] }
   0x4   :  { %v1217_v6 = vpack.c.bf16 %v39_v5, %v38_v4 }
   0x6   :  { %72 = vmatpush.bf16.msra.mxu0 %v1039_v2 }
   0x7   :  { %107 = vmatpush.bf16.msra.mxu1 %v1041_v3 }
   0x8   :  { %15 = vsyncpa [#allocation3], 0  ;;  %v1044_v7 = vld [vmem:[%s1438_s3 + $0x8] sm:$0xff]  ;;  %v1043_v8 = vld [vmem:[%s1438_s3] sm:$0xff]  ;;  %vm152_vm1 = vcmask 130048   ;;  %s851_s23 = sshll.u32 %s1445_s10, 4  ;;  %s852_s23 = int_to_ptr.hbm [resolvable:$true] %s851_s23 }
   0x9   :  { %871 = vmatmul.msk.bf16.vlgmr.msra.gmra.mxu0 %vm61_vm0, %v1217_v6  ;;  %141 = vmatpush.bf16.msra.mxu2 %v1044_v7  ;;  %v1049_v9 = vld [vmem:[%s1437_s2 + $0x18] sm:$0xff]  ;;  %v1048_v10 = vld [vmem:[%s1437_s2 + $0x10] sm:$0xff]  ;;  %v1071_v13 = vld [vmem:[%s1440_s5] ss:$0 sm:$0xff]  ;;  %s1142_s24 = smov 128  }
   0xa   :  { %880 = vmatmul.msk.bf16.vlgmr.msra.gmra.mxu1 %vm61_vm0, %v1217_v6  ;;  %v1070_v17 = vld [vmem:[%s1439_s4] ss:$0 sm:$0xff]  ;;  %v1047_v24 = vld [vmem:[%s1436_s1 + $0x18] sm:$0xff]  ;;  %v1046_v25 = vld [vmem:[%s1436_s1 + $0x10] sm:$0xff] }
   0xb   :  { %244 = vmatpush.bf16.msrb.mxu1 %v1047_v24  ;;  %v1258_v26 = vld [vmem:[%s1444_s9] sm:$0xff]  ;;  %v1265_v30 = vld [vmem:[%s1444_s9 + $0x8] sm:$0xff]  ;;  %v1051_v0 = vld [vmem:[%s1438_s3 + $0x18] sm:$0xff] }
   0xc   :  { %v1072_v35 = vld [vmem:[%s1441_s6] ss:$0 sm:$0xff]  ;;  %v1073_v41 = vld [vmem:[%s1440_s5 + $0x1] ss:$0 sm:$0xff]  ;;  %v1050_v1 = vld [vmem:[%s1438_s3 + $0x10] sm:$0xff] }
   0xd   :  { %142 = vmatpush.bf16.msra.mxu2 %v1043_v8  ;;  %v1074_v59 = vld [vmem:[%s1439_s4 + $0x1] ss:$0 sm:$0xff] }
   0xe   :  { %v1045_v2 = vld [vmem:[%s1442_s7] sm:$0xff] }
   0xf   :  { %245 = vmatpush.bf16.msrb.mxu1 %v1046_v25 }
  0x10   :  { %889 = vmatmul.msk.bf16.vlgmr.msra.gmra.mxu2 %vm61_vm0, %v1217_v6 }
  0x11   :  { %281 = vmatpush.bf16.msrb.mxu2 %v1049_v9 }
  0x15   :  { %282 = vmatpush.bf16.msrb.mxu2 %v1048_v10 }
  0x1a   :  { %905 = vmatmul.msk.bf16.vlgmr.msrb.gmra.mxu1 %vm61_vm0, %v1217_v6 }
  0x20   :  { %919 = vmatmul.msk.bf16.vlgmr.msrb.gmra.mxu2 %vm61_vm0, %v1217_v6 }
  0x86   :  { %v74_v12 = vpop.f32.mrf.mxu0 }
  0x87   :  { %v109_v11 = vpop.f32.mrf.mxu1  ;;  %v75_v21 = vadd.f32 %v1070_v17, %v74_v12 }
  0x88   :  { %v110_v15 = vadd.f32 %v1071_v13, %v109_v11 }
  0x8e   :  { %v76_v19 = vpop.f32.mrf.mxu0 }
  0x8f   :  { %v111_v14 = vpop.f32.mrf.mxu1  ;;  %v77_v22 = vadd.f32 %v1070_v17, %v76_v19 }
  0x90   :  { %v112_v16 = vadd.f32 %v1071_v13, %v111_v14 }
  0x91   :  { %v79_v23 = vpack.c.bf16 %v77_v22, %v75_v21  ;;  %v1075_v21 = vld [vmem:[%s1441_s6 + $0x1] ss:$0 sm:$0xff] }
  0x92   :  { %v114_v18 = vpack.c.bf16 %v112_v16, %v110_v15  ;;  %v1305_v16 = vld [vmem:[%s1444_s9 + $0x18] sm:$0xff] }
  0x93   :  { %v144_v34 = vpop.f32.mrf.mxu2 }
  0x94   :  { %v157_v20 = vsel %vm152_vm1, %v114_v18, 0  ;;  %v145_v36 = vadd.f32 %v1072_v35, %v144_v34 }
  0x95   :  { %166 = vmatpush.bf16.xpose.msra.mxu3 %v157_v20 }
  0x97   :  { %v247_v56 = vpop.f32.mrf.mxu1 }
  0x98   :  { %v248_v61 = vadd.f32 %v1074_v59, %v247_v56 }
  0x9b   :  { %v146_v37 = vpop.f32.mrf.mxu2 }
  0x9c   :  { %890 = vmatmul.msk.bf16.vlgmr.msra.gmra.mxu3 %vm152_vm1, %v79_v23  ;;  %v147_v38 = vadd.f32 %v1072_v35, %v146_v37  ;;  %v1053_v35 = vld [vmem:[%s1436_s1] sm:$0xff] }
  0x9d   :  { %318 = vmatpush.bf16.msrb.mxu3 %v1051_v0 }
  0x9e   :  { %v149_v39 = vpack.c.bf16 %v147_v38, %v145_v36 }
  0x9f   :  { %v249_v60 = vpop.f32.mrf.mxu1 }
  0xa0   :  { %202 = vmatpush.bf16.msrb.mxu0 %v149_v39  ;;  %v250_v62 = vadd.f32 %v1074_v59, %v249_v60  ;;  %v1076_v59 = vld [vmem:[%s1440_s5] ss:$0 sm:$0xff] }
  0xa1   :  { %319 = vmatpush.bf16.msrb.mxu3 %v1050_v1 }
  0xa2   :  { %v252_v63 = vpack.c.bf16 %v250_v62, %v248_v61 }
  0xa3   :  { %v284_v40 = vpop.f32.mrf.mxu2 }
  0xa4   :  { %v285_v42 = vadd.f32 %v1073_v41, %v284_v40 }
  0xa5   :  { %433 = vmatpush.bf16.msra.mxu3 %v1045_v2 }
  0xab   :  { %v286_v43 = vpop.f32.mrf.mxu2 }
  0xac   :  { %v287_v44 = vadd.f32 %v1073_v41, %v286_v43  ;;  %933 = vmatmul.msk.bf16.vlgmr.msrb.gmra.mxu3 %vm61_vm0, %v1217_v6  ;;  %v1298_v6 = vld [vmem:[%s1444_s9 + $0x10] sm:$0xff]  ;;  %s1143_s9 = smov 8  }
  0xae   :  { %v289_v45 = vpack.c.bf16 %v287_v44, %v285_v42 }
  0xb0   :  { %v334_v46 = vsel %vm152_vm1, %v289_v45, 0 }
  0xb1   :  { %343 = vmatpush.bf16.xpose.msra.mxu0 %v334_v46  ;;  %v1052_v46 = vld [vmem:[%s1442_s7 + $0x8] sm:$0xff] }
  0xb2   :  { %410 = vmatpush.bf16.msra.mxu2 %v1052_v46 }
 0x11f   :  { %v168_v27 = vpop.f32.mrf.mxu3 }
 0x120   :  { %v169_v28 = vadd.f32 %v168_v27, %v1258_v26  ;;  %v1056_v27 = vld [vmem:[%s1437_s2 + $0x8] sm:$0xff] }
 0x122   :  { %v173_v29 = vsel %vm152_vm1, %v169_v28, -inf }
 0x123   :  { %174 = vmax.xlane.f32.xlu0 %v173_v29  ;;  %v1054_v29 = vld [vmem:[%s1436_s1 + $0x8] sm:$0xff] }
 0x127   :  { %v170_v31 = vpop.f32.mrf.mxu3 }
 0x128   :  { %v171_v32 = vadd.f32 %v170_v31, %v1265_v30  ;;  %v950_v31 = vld [vmem:[%s1435_s0 + $0x10] sm:$0xff] }
 0x12a   :  { %v176_v33 = vsel %vm152_vm1, %v171_v32, -inf }
 0x12b   :  { %177 = vmax.xlane.f32.xlu0 %v176_v33 }
 0x12f   :  { %v321_v20 = vpop.f32.mrf.mxu3 }
 0x130   :  { %v322_v22 = vadd.f32 %v1075_v21, %v321_v20 }
 0x137   :  { %v323_v23 = vpop.f32.mrf.mxu3 }
 0x138   :  { %v324_v24 = vadd.f32 %v1075_v21, %v323_v23 }
 0x13a   :  { %v326_v25 = vpack.c.bf16 %v324_v24, %v322_v22 }
 0x13c   :  { %379 = vmatpush.bf16.msra.mxu1 %v326_v25 }
 0x140   :  { %515 = vmatpush.bf16.msrb.mxu1 %v1056_v27 }
 0x196   :  { %v175_v47 = vpop.xlane.xlu0 %174 }
 0x197   :  { %v179_v48 = vsub.f32 %v169_v28, %v175_v47  ;;  %v1055_v28 = vld [vmem:[%s1437_s2] sm:$0xff] }
 0x198   :  { %516 = vmatpush.bf16.msrb.mxu1 %v1055_v28 }
 0x199   :  { %v181_v49 = vmul.f32 1.442695, %v179_v48 }
 0x19b   :  { %1083 = vpow2.f32 %v181_v49 }
 0x19e   :  { %v178_v50 = vpop.xlane.xlu0 %177 }
 0x19f   :  { %v180_v51 = vsub.f32 %v171_v32, %v178_v50  ;;  %v951_v32 = vld [vmem:[%s1435_s0 + $0x18] sm:$0xff]  ;;  %v1058_v50 = vld [vmem:[%s1438_s3 + $0x8] sm:$0xff] }
 0x1a0   :  { %v1330_v36 = vpack.c.bf16 %v951_v32, %v950_v31  ;;  %550 = vmatpush.bf16.msrb.mxu2 %v1058_v50  ;;  %v1079_v31 = vld [vmem:[%s1441_s6] ss:$0 sm:$0xff] }
 0x1a1   :  { %v1084_v52 = vpop.eup %1083  ;;  %v183_v53 = vmul.f32 1.442695, %v180_v51 }
 0x1a2   :  { %v185_v54 = vsel %vm152_vm1, %v1084_v52, 0.0 }
 0x1a3   :  { %1085 = vpow2.f32 %v183_v53  ;;  %186 = vadd.xlane.f32.xlu2 %v185_v54 }
 0x1a9   :  { %v1086_v55 = vpop.eup %1085 }
 0x1aa   :  { %v188_v57 = vsel %vm152_vm1, %v1086_v55, 0.0  ;;  %v191_v58 = vpack.c.bf16 %v1086_v55, %v1084_v52 }
 0x1ab   :  { %189 = vadd.xlane.f32.xlu2 %v188_v57 }
 0x1ac   :  { %891 = vmatmul.msk.bf16.vlgmr.msrb.gmra.mxu0 %vm152_vm1, %v191_v58 }
 0x1ad   :  { %480 = vmatpush.bf16.msrb.mxu0 %v1054_v29 }
 0x1b1   :  { %481 = vmatpush.bf16.msrb.mxu0 %v1053_v35 }
 0x1bc   :  { %936 = vmatmul.msk.bf16.vlgmr.msra.gmra.mxu0 %vm152_vm1, %v252_v63  ;;  %v1077_v63 = vld [vmem:[%s1439_s4] ss:$0 sm:$0xff] }
 0x1cc   :  { %960 = vmatmul.msk.bf16.vlgmr.msrb.gmra.mxu0 %vm61_vm0, %v1330_v36 }
 0x216   :  { %v187_v3 = vpop.xlane.xlu2 %186 }
 0x217   :  { %1087 = vrcp.f32 %v187_v3 }
 0x21d   :  { %v1088_v7 = vpop.eup %1087 }
 0x21e   :  { %v190_v4 = vpop.xlane.xlu2 %189 }
 0x21f   :  { %1089 = vrcp.f32 %v190_v4 }
 0x225   :  { %v1090_v8 = vpop.eup %1089 }
 0x229   :  { %v204_v5 = vpop.f32.mrf.mxu0 }
 0x22a   :  { %v211_v10 = vmul.f32 %v1088_v7, %v204_v5  ;;  %v1057_v7 = vld [vmem:[%s1438_s3] sm:$0xff] }
 0x22b   :  { %551 = vmatpush.bf16.msrb.mxu2 %v1057_v7 }
 0x231   :  { %v206_v9 = vpop.f32.mrf.mxu0 }
 0x232   :  { %v212_v11 = vmul.f32 %v1090_v8, %v206_v9  ;;  %v1063_v8 = vld [vmem:[%s1437_s2 + $0x18] sm:$0xff]  ;;  %v1062_v9 = vld [vmem:[%s1437_s2 + $0x10] sm:$0xff] }
 0x234   :  { %v213_v12 = vpack.c.bf16 %v212_v11, %v211_v10  ;;  %v1061_v10 = vld [vmem:[%s1436_s1 + $0x18] sm:$0xff] }
 0x236   :  { %949 = vmatmul.msk.bf16.vlgmr.msra.gmra.mxu3 %vm152_vm1, %v213_v12  ;;  %v1060_v12 = vld [vmem:[%s1436_s1 + $0x10] sm:$0xff] }
 0x239   :  { %v345_v13 = vpop.f32.mrf.mxu0 }
 0x23a   :  { %v346_v14 = vadd.f32 %v1298_v6, %v345_v13  ;;  %v1376_v13 = vld [vmem:[%s1443_s8] ss:$0 sm:$0xff] }
 0x23c   :  { %v350_v15 = vsel %vm152_vm1, %v346_v14, -inf }
 0x23d   :  { %351 = vmax.xlane.f32.xlu1 %v350_v15 }
 0x241   :  { %v347_v17 = vpop.f32.mrf.mxu0 }
 0x242   :  { %v348_v18 = vadd.f32 %v1305_v16, %v347_v17 }
 0x244   :  { %v353_v19 = vsel %vm152_vm1, %v348_v18, -inf }
 0x245   :  { %354 = vmax.xlane.f32.xlu1 %v353_v19 }
 0x249   :  { %v483_v58 = vpop.f32.mrf.mxu0 }
 0x24a   :  { %v484_v3 = vadd.f32 %v1077_v63, %v483_v58  ;;  %v1065_v58 = vld [vmem:[%s1438_s3 + $0x18] sm:$0xff] }
 0x251   :  { %v485_v1 = vpop.f32.mrf.mxu0 }
 0x252   :  { %v486_v4 = vadd.f32 %v1077_v63, %v485_v1 }
 0x254   :  { %v488_v5 = vpack.c.bf16 %v486_v4, %v484_v3 }
 0x2b0   :  { %v352_v33 = vpop.xlane.xlu1 %351 }
 0x2b1   :  { %v356_v34 = vsub.f32 %v346_v14, %v352_v33 }
 0x2b3   :  { %v358_v37 = vmul.f32 1.442695, %v356_v34 }
 0x2b5   :  { %1091 = vpow2.f32 %v358_v37  ;;  %v1080_v37 = vld [vmem:[%s1440_s5 + $0x1] ss:$0 sm:$0xff] }
 0x2b8   :  { %v355_v38 = vpop.xlane.xlu1 %354 }
 0x2b9   :  { %v357_v39 = vsub.f32 %v348_v18, %v355_v38  ;;  %v435_v11 = vpop.f32.mrf.mxu3 }
 0x2bb   :  { %v1092_v40 = vpop.eup %1091  ;;  %v360_v41 = vmul.f32 1.442695, %v357_v39 }
 0x2bc   :  { %v362_v42 = vsel %vm152_vm1, %v1092_v40, 0.0 }
 0x2bd   :  { %1093 = vpow2.f32 %v360_v41  ;;  %363 = vadd.xlane.f32.xlu0 %v362_v42 }
 0x2c1   :  { %v437_v18 = vpop.f32.mrf.mxu3 }
 0x2c3   :  { %v1094_v43 = vpop.eup %1093 }
 0x2c4   :  { %v368_v44 = vpack.c.bf16 %v1094_v43, %v1092_v40  ;;  %v365_v45 = vsel %vm152_vm1, %v1094_v43, 0.0 }
 0x2c5   :  { %366 = vadd.xlane.f32.xlu1 %v365_v45 }
 0x2c6   :  { %937 = vmatmul.msk.bf16.vlgmr.msra.gmra.mxu1 %vm152_vm1, %v368_v44 }
 0x2c7   :  { %650 = vmatpush.bf16.msra.mxu1 %v1061_v10 }
 0x2cb   :  { %651 = vmatpush.bf16.msra.mxu1 %v1060_v12 }
 0x2d6   :  { %969 = vmatmul.msk.bf16.vlgmr.msrb.gmra.mxu1 %vm61_vm0, %v1330_v36 }
 0x2e6   :  { %994 = vmatmul.msk.bf16.vlgmr.msra.gmra.mxu1 %vm61_vm0, %v1330_v36 }
 0x330   :  { %v364_v47 = vpop.xlane.xlu0 %363 }
 0x331   :  { %1095 = vrcp.f32 %v364_v47 }
 0x337   :  { %v1096_v51 = vpop.eup %1095 }
 0x338   :  { %v367_v48 = vpop.xlane.xlu1 %366 }
 0x339   :  { %1097 = vrcp.f32 %v367_v48 }
 0x33f   :  { %v1098_v52 = vpop.eup %1097 }
 0x343   :  { %v381_v49 = vpop.f32.mrf.mxu1 }
 0x344   :  { %v388_v54 = vmul.f32 %v1096_v51, %v381_v49 }
 0x34b   :  { %v383_v53 = vpop.f32.mrf.mxu1 }
 0x34c   :  { %v389_v55 = vmul.f32 %v1098_v52, %v383_v53  ;;  %v1081_v53 = vld [vmem:[%s1439_s4 + $0x1] ss:$0 sm:$0xff] }
 0x34e   :  { %v390_v56 = vpack.c.bf16 %v389_v55, %v388_v54 }
 0x350   :  { %944 = vmatmul.msk.bf16.vlgmr.msra.gmra.mxu2 %vm152_vm1, %v390_v56 }
 0x351   :  { %685 = vmatpush.bf16.msra.mxu2 %v1063_v8 }
 0x353   :  { %v518_v57 = vpop.f32.mrf.mxu1 }
 0x354   :  { %v519_v61 = vadd.f32 %v1076_v59, %v518_v57 }
 0x355   :  { %686 = vmatpush.bf16.msra.mxu2 %v1062_v9 }
 0x35b   :  { %v520_v60 = vpop.f32.mrf.mxu1 }
 0x35c   :  { %v521_v62 = vadd.f32 %v1076_v59, %v520_v60  ;;  %v1064_v59 = vld [vmem:[%s1438_s3 + $0x10] sm:$0xff] }
 0x35e   :  { %v523_v0 = vpack.c.bf16 %v521_v62, %v519_v61 }
 0x360   :  { %v565_v2 = vsel %vm152_vm1, %v523_v0, 0  ;;  %978 = vmatmul.msk.bf16.vlgmr.msrb.gmra.mxu2 %vm61_vm0, %v1330_v36 }
 0x361   :  { %574 = vmatpush.bf16.xpose.msrb.mxu3 %v565_v2 }
 0x363   :  { %v653_v51 = vpop.f32.mrf.mxu1 }
 0x364   :  { %v654_v55 = vadd.f32 %v1081_v53, %v653_v51 }
 0x368   :  { %979 = vmatmul.msk.bf16.vlgmr.msrb.gmra.mxu3 %vm152_vm1, %v488_v5 }
 0x369   :  { %720 = vmatpush.bf16.msra.mxu3 %v1065_v58 }
 0x36b   :  { %v655_v54 = vpop.f32.mrf.mxu1 }
 0x36c   :  { %v656_v56 = vadd.f32 %v1081_v53, %v655_v54 }
 0x36d   :  { %721 = vmatpush.bf16.msra.mxu3 %v1064_v59 }
 0x36e   :  { %v658_v57 = vpack.c.bf16 %v656_v56, %v654_v55 }
 0x370   :  { %1008 = vmatmul.msk.bf16.vlgmr.msra.gmra.mxu2 %vm61_vm0, %v1330_v36 }
 0x378   :  { %1022 = vmatmul.msk.bf16.vlgmr.msra.gmra.mxu3 %vm61_vm0, %v1330_v36  ;;  %v1082_v36 = vld [vmem:[%s1441_s6 + $0x1] ss:$0 sm:$0xff] }
 0x3d3   :  { %v412_v14 = vpop.f32.mrf.mxu2 }
 0x3d4   :  { %v436_v15 = vadd.f32 %v435_v11, %v412_v14 }
 0x3d6   :  { %v443_v17 = vadd.f32 %v1376_v13, %v436_v15 }
 0x3d8   :  { %445 = vst.msk [vmem:[#allocation2] sm:$0xff] %vm61_vm0, %v443_v17 }
 0x3db   :  { %v414_v19 = vpop.f32.mrf.mxu2 }
 0x3dc   :  { %v438_v20 = vadd.f32 %v437_v18, %v414_v19 }
 0x3de   :  { %v444_v21 = vadd.f32 %v1376_v13, %v438_v20 }
 0x3e0   :  { %446 = vst.msk [vmem:[#allocation2 + $0x8] sm:$0xff] %vm61_vm0, %v444_v21 }
 0x3e3   :  { %v553_v29 = vpop.f32.mrf.mxu2 }
 0x3e4   :  { %v554_v32 = vadd.f32 %v1079_v31, %v553_v29 }
 0x3eb   :  { %v576_v22 = vpop.f32.mrf.mxu3  ;;  %v555_v33 = vpop.f32.mrf.mxu2 }
 0x3ec   :  { %v577_v23 = vadd.f32 %v576_v22, %v1258_v26  ;;  %v556_v34 = vadd.f32 %v1079_v31, %v555_v33 }
 0x3ee   :  { %v581_v24 = vsel %vm152_vm1, %v577_v23, -inf  ;;  %v558_v35 = vpack.c.bf16 %v556_v34, %v554_v32  ;;  %v1066_v32 = vld [vmem:[%s1442_s7 + $0x8] sm:$0xff] }
 0x3ef   :  { %582 = vmax.xlane.f32.xlu2 %v581_v24  ;;  %810 = vmatpush.bf16.msrb.mxu2 %v1066_v32 }
 0x3f0   :  { %610 = vmatpush.bf16.msra.mxu0 %v558_v35 }
 0x3f3   :  { %v578_v25 = vpop.f32.mrf.mxu3  ;;  %v688_v26 = vpop.f32.mrf.mxu2 }
 0x3f4   :  { %v579_v27 = vadd.f32 %v578_v25, %v1265_v30  ;;  %v689_v30 = vadd.f32 %v1080_v37, %v688_v26 }
 0x3f6   :  { %v584_v28 = vsel %vm152_vm1, %v579_v27, -inf }
 0x3f7   :  { %585 = vmax.xlane.f32.xlu0 %v584_v28 }
 0x3fb   :  { %v690_v38 = vpop.f32.mrf.mxu2  ;;  %v723_v5 = vpop.f32.mrf.mxu3 }
 0x3fc   :  { %v691_v39 = vadd.f32 %v1080_v37, %v690_v38  ;;  %v724_v7 = vadd.f32 %v1082_v36, %v723_v5 }
 0x3fe   :  { %v693_v40 = vpack.c.bf16 %v691_v39, %v689_v30 }
 0x400   :  { %v735_v41 = vsel %vm152_vm1, %v693_v40, 0 }
 0x401   :  { %744 = vmatpush.bf16.xpose.msrb.mxu0 %v735_v41 }
 0x403   :  { %v725_v8 = vpop.f32.mrf.mxu3 }
 0x462   :  { %v583_v42 = vpop.xlane.xlu2 %582 }
 0x463   :  { %v587_v43 = vsub.f32 %v577_v23, %v583_v42 }
 0x465   :  { %v589_v44 = vmul.f32 1.442695, %v587_v43 }
 0x467   :  { %1099 = vpow2.f32 %v589_v44 }
 0x46a   :  { %v586_v45 = vpop.xlane.xlu0 %585 }
 0x46b   :  { %v588_v46 = vsub.f32 %v579_v27, %v586_v45 }
 0x46d   :  { %v1100_v47 = vpop.eup %1099  ;;  %v591_v48 = vmul.f32 1.442695, %v588_v46 }
 0x46e   :  { %v593_v49 = vsel %vm152_vm1, %v1100_v47, 0.0 }
 0x46f   :  { %1101 = vpow2.f32 %v591_v48  ;;  %594 = vadd.xlane.f32.xlu0 %v593_v49 }
 0x475   :  { %v1102_v50 = vpop.eup %1101 }
 0x476   :  { %v599_v52 = vpack.c.bf16 %v1102_v50, %v1100_v47  ;;  %v596_v4 = vsel %vm152_vm1, %v1102_v50, 0.0 }
 0x478   :  { %980 = vmatmul.msk.bf16.vlgmr.msra.gmra.mxu0 %vm152_vm1, %v599_v52 }
 0x488   :  { %1025 = vmatmul.msk.bf16.vlgmr.msrb.gmra.mxu0 %vm152_vm1, %v658_v57 }
 0x4e2   :  { %v595_v14 = vpop.xlane.xlu0 %594 }
 0x4f5   :  { %v612_v60 = vpop.f32.mrf.mxu0 }
 0x4fd   :  { %v614_v61 = vpop.f32.mrf.mxu0 }
 0x505   :  { %v746_v62 = vpop.f32.mrf.mxu0 }
 0x506   :  { %v747_v63 = vadd.f32 %v1298_v6, %v746_v62  ;;  %v726_v6 = vadd.f32 %v1082_v36, %v725_v8 }
 0x508   :  { %v751_v0 = vsel %vm152_vm1, %v747_v63, -inf  ;;  %v728_v9 = vpack.c.bf16 %v726_v6, %v724_v7 }
 0x509   :  { %752 = vmax.xlane.f32.xlu1 %v751_v0 }
 0x50a   :  { %780 = vmatpush.bf16.msrb.mxu1 %v728_v9 }
 0x50d   :  { %v748_v1 = vpop.f32.mrf.mxu0 }
 0x50e   :  { %v749_v2 = vadd.f32 %v1305_v16, %v748_v1  ;;  %v1059_v16 = vld [vmem:[%s1442_s7] sm:$0xff]  ;;  %s1141_s7 = smov [#allocation2]  }
 0x50f   :  { %833 = vmatpush.bf16.msrb.mxu3 %v1059_v16  ;;  %s849_s20 = sshll.u32 %s1141_s7, 4  ;;  %s850_s20 = int_to_ptr.vmem [resolvable:$true] %s849_s20 }
 0x510   :  { %v754_v3 = vsel %vm152_vm1, %v749_v2, -inf }
 0x511   :  { %755 = vmax.xlane.f32.xlu2 %v754_v3  ;;  %597 = vadd.xlane.f32.xlu1 %v596_v4 }
 0x57c   :  { %v753_v10 = vpop.xlane.xlu1 %752 }
 0x57d   :  { %v757_v11 = vsub.f32 %v747_v63, %v753_v10 }
 0x57f   :  { %v759_v12 = vmul.f32 1.442695, %v757_v11 }
 0x581   :  { %1103 = vpow2.f32 %v759_v12 }
 0x582   :  { %1105 = vrcp.f32 %v595_v14 }
 0x584   :  { %v756_v15 = vpop.xlane.xlu2 %755  ;;  %v598_v17 = vpop.xlane.xlu1 %597 }
 0x585   :  { %v758_v18 = vsub.f32 %v749_v2, %v756_v15  ;;  %1107 = vrcp.f32 %v598_v17 }
 0x587   :  { %v1104_v19 = vpop.eup %1103  ;;  %v761_v20 = vmul.f32 1.442695, %v758_v18 }
 0x588   :  { %v763_v21 = vsel %vm152_vm1, %v1104_v19, 0.0  ;;  %v1106_v22 = vpop.eup %1105 }
 0x589   :  { %1109 = vpow2.f32 %v761_v20  ;;  %764 = vadd.xlane.f32.xlu2 %v763_v21  ;;  %v619_v24 = vmul.f32 %v1106_v22, %v612_v60 }
 0x58b   :  { %v1108_v23 = vpop.eup %1107 }
 0x58c   :  { %v620_v25 = vmul.f32 %v1108_v23, %v614_v61 }
 0x58e   :  { %v621_v27 = vpack.c.bf16 %v620_v25, %v619_v24 }
 0x58f   :  { %v1110_v28 = vpop.eup %1109 }
 0x590   :  { %v769_v29 = vpack.c.bf16 %v1110_v28, %v1104_v19  ;;  %1038 = vmatmul.msk.bf16.vlgmr.msrb.gmra.mxu3 %vm152_vm1, %v621_v27  ;;  %v766_v31 = vsel %vm152_vm1, %v1110_v28, 0.0 }
 0x591   :  { %767 = vadd.xlane.f32.xlu0 %v766_v31 }
 0x592   :  { %1026 = vmatmul.msk.bf16.vlgmr.msrb.gmra.mxu1 %vm152_vm1, %v769_v29 }
 0x5fc   :  { %v765_v33 = vpop.xlane.xlu2 %764 }
 0x5fd   :  { %1111 = vrcp.f32 %v765_v33 }
 0x603   :  { %v1112_v26 = vpop.eup %1111 }
 0x604   :  { %v768_v34 = vpop.xlane.xlu0 %767 }
 0x605   :  { %1113 = vrcp.f32 %v768_v34 }
 0x60b   :  { %v1114_v37 = vpop.eup %1113 }
 0x60f   :  { %v782_v35 = vpop.f32.mrf.mxu1 }
 0x610   :  { %v789_v30 = vmul.f32 %v1112_v26, %v782_v35 }
 0x613   :  { %v835_v41 = vpop.f32.mrf.mxu3 }
 0x617   :  { %v784_v38 = vpop.f32.mrf.mxu1 }
 0x618   :  { %v790_v39 = vmul.f32 %v1114_v37, %v784_v38 }
 0x61a   :  { %v791_v40 = vpack.c.bf16 %v790_v39, %v789_v30 }
 0x61b   :  { %v837_v45 = vpop.f32.mrf.mxu3 }
 0x61c   :  { %1033 = vmatmul.msk.bf16.vlgmr.msrb.gmra.mxu2 %vm152_vm1, %v791_v40 }
 0x69f   :  { %v812_v42 = vpop.f32.mrf.mxu2 }
 0x6a0   :  { %v836_v43 = vadd.f32 %v835_v41, %v812_v42 }
 0x6a2   :  { %v840_v44 = vadd.f32 %v1376_v13, %v836_v43 }
 0x6a4   :  { %843 = vst.msk [vmem:[#allocation2 + $0x10] sm:$0xff] %vm61_vm0, %v840_v44 }
 0x6a7   :  { %v814_v46 = vpop.f32.mrf.mxu2 }
 0x6a8   :  { %v838_v47 = vadd.f32 %v837_v45, %v814_v46 }
 0x6aa   :  { %v841_v48 = vadd.f32 %v1376_v13, %v838_v47 }
 0x6ac   :  { %844 = vst.msk [vmem:[#allocation2 + $0x18] sm:$0xff] %vm61_vm0, %v841_v48 }
 0x6ad   :  { %857 = dma.vmem_to_hbm [thread:$0]  %s850_s20, 512, %s852_s23, [#allocation3], %s1142_s24, %s1142_s24, %s1143_s9  }
 0x6ae   :  { %1139 = dma.done.wait [#allocation3], 512  }
 0x6af   :  { %1140 = vsyncadd [#allocation3], 4294966784 }
 0x6b0   :  { %862 = vsyncpa [#allocation3], 1 }

</bundles_post_ra>
